<compile_context>
chip_gen: v7x
topology: tpu7x:2x2x1
jax: 0.10.0
libtpu: 0.0.40
codegen_flags: <defaults>
</compile_context>

<pallas_src>
import functools

import jax
import jax.numpy as jnp
from jax.experimental import pallas as pl
from jax.experimental.pallas import tpu as pltpu

STABILITY_EPS = 1e-5
# (x - 1e30)^2 overflows to +inf in both f32 and bf16 (max ~3.4e38), so
# exp(-inf) == 0 for every padded column.  Do NOT change the sentinel or the
# compute dtype (e.g. fp16, max ~65504) without re-checking this.
_PAD_SENTINEL = 1e30
_TM_MAX = 256                 # row tile (parallel axis)


def _round_up(v, m):
    return ((v + m - 1) // m) * m


def _snn_reg_loss_kernel(x_rows_ref, xt_cols_ref, y_col_ref, y_row_ref, o_ref,
                         num_acc, den_acc, den1_acc,
                         *, T, threshold, f, compute_dtype):
    # All grid queries at kernel top level (never inside pl.when bodies).
    j = pl.program_id(1)
    last_j = pl.num_programs(1) - 1

    @pl.when(j == 0)
    def _():
        num_acc[...] = jnp.zeros_like(num_acc)
        den_acc[...] = jnp.zeros_like(den_acc)
        den1_acc[...] = jnp.zeros_like(den1_acc)

    neg_inv_t = jnp.asarray(-1.0 / T, dtype=compute_dtype)
    zero = jnp.zeros((), dtype=compute_dtype)

    x_rows = x_rows_ref[...].astype(compute_dtype)     # (TM, F)
    xt_cols = xt_cols_ref[...].astype(compute_dtype)   # (F, TN)
    y_col = y_col_ref[...]                              # (TM, 1) f32
    y_row = y_row_ref[...]                              # (1, TN) f32

    # Boolean same-class mask; its diagonal (always True for threshold >= 0)
    # is removed by the finalize-time scalar subtraction, not an eye mask.
    same = jnp.abs(y_row - y_col) <= threshold          # bool (TM, TN)

    def pairwise_exp(c):
        d = x_rows[:, c:c + 1] - xt_cols[c:c + 1, :]     # (TM, TN)
        return jnp.exp(d * d * neg_inv_t)

    def masked_row_sum(e):
        # accumulate in f32 even when the exp chain runs in bf16
        return jnp.sum(jnp.where(same, e, zero), axis=1, keepdims=True,
                       dtype=jnp.float32)

    # feature column 1 drives numerator and denominator
    e1 = pairwise_exp(1)
    den_acc[...] += jnp.sum(e1, axis=1, keepdims=True, dtype=jnp.float32)
    num_acc[...] += masked_row_sum(e1)

    # feature columns {0, 2..F-1} drive denominator1: each feature's masked
    # row-sum goes straight into the (TM, 1) accumulator, so there is no
    # (TM, TN) running accumulator round-tripping through VMEM per feature.
    # TODO(synk): for large F, switch to lax.fori_loop with a feature-major
    # (F, TM) row operand so the per-feature index is leading-axis address
    # arithmetic instead of a lane slice, and chunk F for v7x's 64 MiB VMEM.
    den1 = masked_row_sum(pairwise_exp(0))
    for c in range(2, f):
        den1 = den1 + masked_row_sum(pairwise_exp(c))
    den1_acc[...] += den1

    @pl.when(j == last_j)
    def _():
        # Remove the diagonal contribution: exp(0) = 1 (exact even in bf16,
        # since row and column tiles are cast from the same value) and
        # same_class[i, i] = 1.  Column 1 contributes 1 to num/den; the F-1
        # remaining columns contribute (F-1) to den1_acc, i.e. 1 after the
        # 1/(F-1) normalization applied here on the (TM, 1) sums.
        num_s = num_acc[...] - 1.0
        den_s = den_acc[...] - 1.0
        den1_s = den1_acc[...] * jnp.float32(1.0 / (f - 1)) - 1.0
        ratio = num_s / (STABILITY_EPS + 0.5 * den_s + 0.5 * den1_s)
        # Padded rows produce garbage-but-finite values here; the wrapper
        # slices [:b] before the mean, so no in-kernel row masking is needed.
        o_ref[...] = -jnp.log(STABILITY_EPS + ratio)


def snn_reg_loss(x, y, *, T, threshold, compute_dtype=jnp.float32):
    """x: (B, F) float32, y: (B,) or (B, 1) labels. Returns the scalar loss."""
    assert threshold >= 0, "diagonal subtraction requires same_class[i,i] == 1"
    x = x.astype(jnp.float32)
    y = jnp.reshape(y, (-1,)).astype(jnp.float32)
    b, f = x.shape
    assert f >= 2, "module indexes feature column 1"

    # Row tile: aim for >= 2 row tiles so v7x's two TensorCores both get work
    # on the "parallel" axis (v5e/v6e single-TC behaviour is unchanged).
    tm = min(_TM_MAX, _round_up(max(-(-b // 2), 1), 8))
    b_rows = _round_up(b, tm)
    # Column tile (reduction axis, last in the grid): F-aware size — large TN
    # amortizes the fixed per-grid-step overhead when F is small.
    tn_max = 2048 if f <= 16 else 512
    tn = min(tn_max, _round_up(b, 128))
    b_cols = _round_up(b, tn)

    # Pad with a huge sentinel: padded columns contribute exactly 0 (squared
    # distance overflows to +inf, exp -> 0); padded rows are sliced off below.
    x_rows = jnp.pad(x, ((0, b_rows - b), (0, 0)),
                     constant_values=_PAD_SENTINEL)                 # (b_rows, F)
    x_cols_t = jnp.pad(x, ((0, b_cols - b), (0, 0)),
                       constant_values=_PAD_SENTINEL).T             # (F, b_cols)
    y_col = jnp.pad(y, (0, b_rows - b),
                    constant_values=_PAD_SENTINEL).reshape(b_rows, 1)
    y_row = jnp.pad(y, (0, b_cols - b),
                    constant_values=_PAD_SENTINEL).reshape(1, b_cols)

    kernel = functools.partial(_snn_reg_loss_kernel, T=float(T),
                               threshold=float(threshold), f=f,
                               compute_dtype=compute_dtype)

    per_sample = pl.pallas_call(
        kernel,
        out_shape=jax.ShapeDtypeStruct((b_rows, 1), jnp.float32),
        grid=(b_rows // tm, b_cols // tn),
        in_specs=[
            pl.BlockSpec((tm, f), lambda i, j: (i, 0)),   # row tile of x
            pl.BlockSpec((f, tn), lambda i, j: (0, j)),   # column tile of x^T
            pl.BlockSpec((tm, 1), lambda i, j: (i, 0)),   # labels as column
            pl.BlockSpec((1, tn), lambda i, j: (0, j)),   # labels as row
        ],
        out_specs=pl.BlockSpec((tm, 1), lambda i, j: (i, 0)),
        scratch_shapes=[pltpu.VMEM((tm, 1), jnp.float32)] * 3,
        compiler_params=pltpu.CompilerParams(
            dimension_semantics=("parallel", "arbitrary"),
            # 48 MiB: plenty for TN=2048 temporaries on v5e/v6e (128 MiB
            # physical) while staying inside v7x's 64 MiB physical VMEM.
            vmem_limit_bytes=48 * 1024 * 1024),
    )(x_rows, x_cols_t, y_col, y_row)

    # Drop padded rows, then average over the true batch.
    return jnp.mean(per_sample[:b, 0])


def _reference(x, y, T, threshold):
    # pure-JAX reference mirroring the PyTorch forward exactly
    x = x.astype(jnp.float32)
    y = jnp.reshape(y, (-1,)).astype(jnp.float32)
    b, f = x.shape
    abs_diff = jnp.abs(y[None, :] - y[:, None])
    same = (abs_diff <= threshold).astype(jnp.float32)
    not_eye = 1.0 - jnp.eye(b, dtype=jnp.float32)

    def pe(i):
        xc = x[:, i][:, None]
        sq = (xc - xc.T) ** 2
        return jnp.exp(-(sq / T)) * not_eye

    e1 = pe(1)
    num = e1 * same
    den = e1
    exp_all = pe(0) * same
    for i in range(2, f):
        exp_all = exp_all + pe(i) * same
    den1 = exp_all / float(f - 1)
    ratio = num.sum(1) / (STABILITY_EPS + 0.5 * den.sum(1) + 0.5 * den1.sum(1))
    return jnp.mean(-jnp.log(STABILITY_EPS + ratio))


if __name__ == "__main__":
    T = 2.0
    threshold = 0.5

    key = jax.random.PRNGKey(0)
    # second case exercises the row/column padding path and >1 row tile
    for b, f in ((8, 4), (10, 4)):
        key, kx, ky = jax.random.split(key, 3)
        x = jax.random.normal(kx, (b, f), dtype=jnp.float32)
        # integer-ish labels in {0,1,2} stored as float, with a trailing
        # singleton dim the module squeezes away
        y = jax.random.randint(ky, (b, 1), 0, 3).astype(jnp.float32)

        ref = jax.block_until_ready(_reference(x, y, T, threshold))

        # default f32 compute path: tight tolerance
        loss = jax.block_until_ready(snn_reg_loss(x, y, T=T, threshold=threshold))
        assert jnp.allclose(loss, ref, rtol=1e-5, atol=1e-5), (b, f, loss, ref)

        # bf16 exp/VPU path (v6e/v7x lever): looser tolerance per bf16 exp error
        loss_bf16 = jax.block_until_ready(
            snn_reg_loss(x, y, T=T, threshold=threshold,
                         compute_dtype=jnp.bfloat16))
        assert jnp.allclose(loss_bf16, ref, rtol=1e-1, atol=1e-1), (
            b, f, loss_bf16, ref)

    print("KERNEL_OK")
</pallas_src>

<mosaic_0001>
module attributes {stable_mosaic.version = 11 : i64} {
  func.func @_snn_reg_loss_kernel(%arg0: i32, %arg1: i32, %arg2: memref<8x4xf32, #tpu.memory_space<vmem>>, %arg3: memref<4x128xf32, #tpu.memory_space<vmem>>, %arg4: memref<8x1xf32, #tpu.memory_space<vmem>>, %arg5: memref<1x128xf32, #tpu.memory_space<vmem>>, %arg6: memref<8x1xf32, #tpu.memory_space<vmem>>, %arg7: memref<8x1xf32, #tpu.memory_space<vmem>>, %arg8: memref<8x1xf32, #tpu.memory_space<vmem>>, %arg9: memref<8x1xf32, #tpu.memory_space<vmem>>) attributes {dimension_semantics = [#tpu.dimension_semantics<parallel>, #tpu.dimension_semantics<arbitrary>], iteration_bounds = array<i64: 1, 1>, scalar_prefetch = 0 : i64, scratch_operands = 3 : i64, tpu.core_type = #tpu.core_type<tc>, window_params = [{transform_indices = @transform_0, window_bounds = array<i64: 8, 4>}, {transform_indices = @transform_1, window_bounds = array<i64: 4, 128>}, {transform_indices = @transform_2, window_bounds = array<i64: 8, 1>}, {transform_indices = @transform_3, window_bounds = array<i64: 1, 128>}, {transform_indices = @transform_4, window_bounds = array<i64: 8, 1>}]} {
    %c0_i32 = arith.constant 0 : i32
    %0 = arith.cmpi eq, %arg1, %c0_i32 : i32
    %1 = arith.extui %0 : i1 to i32
    %c0_i32_0 = arith.constant 0 : i32
    %2 = arith.cmpi ne, %1, %c0_i32_0 : i32
    scf.if %2 {
      %cst_35 = arith.constant 0.000000e+00 : f32
      %81 = vector.broadcast %cst_35 : f32 to vector<8x1xf32>
      %c0_36 = arith.constant 0 : index
      %c0_37 = arith.constant 0 : index
      %82 = vector.load %arg7[%c0_36, %c0_37] : memref<8x1xf32, #tpu.memory_space<vmem>>, vector<8x1xf32>
      tpu.vector_store %arg7[%c0_36, %c0_37], %81 {strides = array<i32>} : memref<8x1xf32, #tpu.memory_space<vmem>>, vector<8x1xf32>,
      %cst_38 = arith.constant 0.000000e+00 : f32
      %83 = vector.broadcast %cst_38 : f32 to vector<8x1xf32>
      %c0_39 = arith.constant 0 : index
      %c0_40 = arith.constant 0 : index
      %84 = vector.load %arg8[%c0_39, %c0_40] : memref<8x1xf32, #tpu.memory_space<vmem>>, vector<8x1xf32>
      tpu.vector_store %arg8[%c0_39, %c0_40], %83 {strides = array<i32>} : memref<8x1xf32, #tpu.memory_space<vmem>>, vector<8x1xf32>,
      %cst_41 = arith.constant 0.000000e+00 : f32
      %85 = vector.broadcast %cst_41 : f32 to vector<8x1xf32>
      %c0_42 = arith.constant 0 : index
      %c0_43 = arith.constant 0 : index
      %86 = vector.load %arg9[%c0_42, %c0_43] : memref<8x1xf32, #tpu.memory_space<vmem>>, vector<8x1xf32>
      tpu.vector_store %arg9[%c0_42, %c0_43], %85 {strides = array<i32>} : memref<8x1xf32, #tpu.memory_space<vmem>>, vector<8x1xf32>,
    } else {
    }
    %c0 = arith.constant 0 : index
    %c0_1 = arith.constant 0 : index
    %3 = vector.load %arg2[%c0, %c0_1] : memref<8x4xf32, #tpu.memory_space<vmem>>, vector<8x4xf32>
    %c0_2 = arith.constant 0 : index
    %c0_3 = arith.constant 0 : index
    %4 = vector.load %arg3[%c0_2, %c0_3] : memref<4x128xf32, #tpu.memory_space<vmem>>, vector<4x128xf32>
    %c0_4 = arith.constant 0 : index
    %c0_5 = arith.constant 0 : index
    %5 = vector.load %arg4[%c0_4, %c0_5] : memref<8x1xf32, #tpu.memory_space<vmem>>, vector<8x1xf32>
    %c0_6 = arith.constant 0 : index
    %c0_7 = arith.constant 0 : index
    %6 = vector.load %arg5[%c0_6, %c0_7] : memref<1x128xf32, #tpu.memory_space<vmem>>, vector<1x128xf32>
    %7 = vector.broadcast %6 : vector<1x128xf32> to vector<8x128xf32>
    %8 = vector.broadcast %5 : vector<8x1xf32> to vector<8x128xf32>
    %9 = arith.subf %7, %8 : vector<8x128xf32>
    %10 = math.absf %9 : vector<8x128xf32>
    %cst = arith.constant 5.000000e-01 : f32
    %11 = vector.broadcast %cst : f32 to vector<8x128xf32>
    %12 = arith.cmpf ole, %10, %11 : vector<8x128xf32>
    %13 = vector.extract_strided_slice %3 {offsets = [0, 1], sizes = [8, 1], strides = [1, 1]} : vector<8x4xf32> to vector<8x1xf32>
    %14 = vector.extract_strided_slice %4 {offsets = [1, 0], sizes = [1, 128], strides = [1, 1]} : vector<4x128xf32> to vector<1x128xf32>
    %15 = vector.broadcast %13 : vector<8x1xf32> to vector<8x128xf32>
    %16 = vector.broadcast %14 : vector<1x128xf32> to vector<8x128xf32>
    %17 = arith.subf %15, %16 : vector<8x128xf32>
    %18 = arith.mulf %17, %17 : vector<8x128xf32>
    %cst_8 = arith.constant -5.000000e-01 : f32
    %19 = vector.broadcast %cst_8 : f32 to vector<8x128xf32>
    %20 = arith.mulf %18, %19 : vector<8x128xf32>
    %21 = math.exp %20 : vector<8x128xf32>
    %c0_9 = arith.constant 0 : index
    %c0_10 = arith.constant 0 : index
    %22 = vector.load %arg8[%c0_9, %c0_10] : memref<8x1xf32, #tpu.memory_space<vmem>>, vector<8x1xf32>
    %cst_11 = arith.constant dense<0.000000e+00> : vector<8xf32>
    %23 = vector.multi_reduction <add>, %21, %cst_11 [1] : vector<8x128xf32> to vector<8xf32>
    %24 = vector.shape_cast %23 : vector<8xf32> to vector<8x1xf32>
    %25 = arith.addf %22, %24 : vector<8x1xf32>
    %c0_12 = arith.constant 0 : index
    %c0_13 = arith.constant 0 : index
    %26 = vector.load %arg8[%c0_12, %c0_13] : memref<8x1xf32, #tpu.memory_space<vmem>>, vector<8x1xf32>
    tpu.vector_store %arg8[%c0_12, %c0_13], %25 {strides = array<i32>} : memref<8x1xf32, #tpu.memory_space<vmem>>, vector<8x1xf32>,
    %c0_14 = arith.constant 0 : index
    %c0_15 = arith.constant 0 : index
    %27 = vector.load %arg7[%c0_14, %c0_15] : memref<8x1xf32, #tpu.memory_space<vmem>>, vector<8x1xf32>
    %cst_16 = arith.constant 0.000000e+00 : f32
    %28 = vector.broadcast %cst_16 : f32 to vector<8x128xf32>
    %29 = arith.select %12, %21, %28 : vector<8x128xi1>, vector<8x128xf32>
    %cst_17 = arith.constant dense<0.000000e+00> : vector<8xf32>
    %30 = vector.multi_reduction <add>, %29, %cst_17 [1] : vector<8x128xf32> to vector<8xf32>
    %31 = vector.shape_cast %30 : vector<8xf32> to vector<8x1xf32>
    %32 = arith.addf %27, %31 : vector<8x1xf32>
    %c0_18 = arith.constant 0 : index
    %c0_19 = arith.constant 0 : index
    %33 = vector.load %arg7[%c0_18, %c0_19] : memref<8x1xf32, #tpu.memory_space<vmem>>, vector<8x1xf32>
    tpu.vector_store %arg7[%c0_18, %c0_19], %32 {strides = array<i32>} : memref<8x1xf32, #tpu.memory_space<vmem>>, vector<8x1xf32>,
    %34 = vector.extract_strided_slice %3 {offsets = [0, 0], sizes = [8, 1], strides = [1, 1]} : vector<8x4xf32> to vector<8x1xf32>
    %35 = vector.extract_strided_slice %4 {offsets = [0, 0], sizes = [1, 128], strides = [1, 1]} : vector<4x128xf32> to vector<1x128xf32>
    %36 = vector.broadcast %34 : vector<8x1xf32> to vector<8x128xf32>
    %37 = vector.broadcast %35 : vector<1x128xf32> to vector<8x128xf32>
    %38 = arith.subf %36, %37 : vector<8x128xf32>
    %39 = arith.mulf %38, %38 : vector<8x128xf32>
    %cst_20 = arith.constant -5.000000e-01 : f32
    %40 = vector.broadcast %cst_20 : f32 to vector<8x128xf32>
    %41 = arith.mulf %39, %40 : vector<8x128xf32>
    %42 = math.exp %41 : vector<8x128xf32>
    %cst_21 = arith.constant 0.000000e+00 : f32
    %43 = vector.broadcast %cst_21 : f32 to vector<8x128xf32>
    %44 = arith.select %12, %42, %43 : vector<8x128xi1>, vector<8x128xf32>
    %cst_22 = arith.constant dense<0.000000e+00> : vector<8xf32>
    %45 = vector.multi_reduction <add>, %44, %cst_22 [1] : vector<8x128xf32> to vector<8xf32>
    %46 = vector.shape_cast %45 : vector<8xf32> to vector<8x1xf32>
    %47 = vector.extract_strided_slice %3 {offsets = [0, 2], sizes = [8, 1], strides = [1, 1]} : vector<8x4xf32> to vector<8x1xf32>
    %48 = vector.extract_strided_slice %4 {offsets = [2, 0], sizes = [1, 128], strides = [1, 1]} : vector<4x128xf32> to vector<1x128xf32>
    %49 = vector.broadcast %47 : vector<8x1xf32> to vector<8x128xf32>
    %50 = vector.broadcast %48 : vector<1x128xf32> to vector<8x128xf32>
    %51 = arith.subf %49, %50 : vector<8x128xf32>
    %52 = arith.mulf %51, %51 : vector<8x128xf32>
    %cst_23 = arith.constant -5.000000e-01 : f32
    %53 = vector.broadcast %cst_23 : f32 to vector<8x128xf32>
    %54 = arith.mulf %52, %53 : vector<8x128xf32>
    %55 = math.exp %54 : vector<8x128xf32>
    %cst_24 = arith.constant 0.000000e+00 : f32
    %56 = vector.broadcast %cst_24 : f32 to vector<8x128xf32>
    %57 = arith.select %12, %55, %56 : vector<8x128xi1>, vector<8x128xf32>
    %cst_25 = arith.constant dense<0.000000e+00> : vector<8xf32>
    %58 = vector.multi_reduction <add>, %57, %cst_25 [1] : vector<8x128xf32> to vector<8xf32>
    %59 = vector.shape_cast %58 : vector<8xf32> to vector<8x1xf32>
    %60 = arith.addf %46, %59 : vector<8x1xf32>
    %61 = vector.extract_strided_slice %3 {offsets = [0, 3], sizes = [8, 1], strides = [1, 1]} : vector<8x4xf32> to vector<8x1xf32>
    %62 = vector.extract_strided_slice %4 {offsets = [3, 0], sizes = [1, 128], strides = [1, 1]} : vector<4x128xf32> to vector<1x128xf32>
    %63 = vector.broadcast %61 : vector<8x1xf32> to vector<8x128xf32>
    %64 = vector.broadcast %62 : vector<1x128xf32> to vector<8x128xf32>
    %65 = arith.subf %63, %64 : vector<8x128xf32>
    %66 = arith.mulf %65, %65 : vector<8x128xf32>
    %cst_26 = arith.constant -5.000000e-01 : f32
    %67 = vector.broadcast %cst_26 : f32 to vector<8x128xf32>
    %68 = arith.mulf %66, %67 : vector<8x128xf32>
    %69 = math.exp %68 : vector<8x128xf32>
    %cst_27 = arith.constant 0.000000e+00 : f32
    %70 = vector.broadcast %cst_27 : f32 to vector<8x128xf32>
    %71 = arith.select %12, %69, %70 : vector<8x128xi1>, vector<8x128xf32>
    %cst_28 = arith.constant dense<0.000000e+00> : vector<8xf32>
    %72 = vector.multi_reduction <add>, %71, %cst_28 [1] : vector<8x128xf32> to vector<8xf32>
    %73 = vector.shape_cast %72 : vector<8xf32> to vector<8x1xf32>
    %74 = arith.addf %60, %73 : vector<8x1xf32>
    %c0_29 = arith.constant 0 : index
    %c0_30 = arith.constant 0 : index
    %75 = vector.load %arg9[%c0_29, %c0_30] : memref<8x1xf32, #tpu.memory_space<vmem>>, vector<8x1xf32>
    %76 = arith.addf %75, %74 : vector<8x1xf32>
    %c0_31 = arith.constant 0 : index
    %c0_32 = arith.constant 0 : index
    %77 = vector.load %arg9[%c0_31, %c0_32] : memref<8x1xf32, #tpu.memory_space<vmem>>, vector<8x1xf32>
    tpu.vector_store %arg9[%c0_31, %c0_32], %76 {strides = array<i32>} : memref<8x1xf32, #tpu.memory_space<vmem>>, vector<8x1xf32>,
    %c0_i32_33 = arith.constant 0 : i32
    %78 = arith.cmpi eq, %arg1, %c0_i32_33 : i32
    %79 = arith.extui %78 : i1 to i32
    %c0_i32_34 = arith.constant 0 : i32
    %80 = arith.cmpi ne, %79, %c0_i32_34 : i32
    scf.if %80 {
      %c0_35 = arith.constant 0 : index
      %c0_36 = arith.constant 0 : index
      %81 = vector.load %arg7[%c0_35, %c0_36] : memref<8x1xf32, #tpu.memory_space<vmem>>, vector<8x1xf32>
      %cst_37 = arith.constant 1.000000e+00 : f32
      %82 = vector.broadcast %cst_37 : f32 to vector<8x1xf32>
      %83 = arith.subf %81, %82 : vector<8x1xf32>
      %c0_38 = arith.constant 0 : index
      %c0_39 = arith.constant 0 : index
      %84 = vector.load %arg8[%c0_38, %c0_39] : memref<8x1xf32, #tpu.memory_space<vmem>>, vector<8x1xf32>
      %cst_40 = arith.constant 1.000000e+00 : f32
      %85 = vector.broadcast %cst_40 : f32 to vector<8x1xf32>
      %86 = arith.subf %84, %85 : vector<8x1xf32>
      %c0_41 = arith.constant 0 : index
      %c0_42 = arith.constant 0 : index
      %87 = vector.load %arg9[%c0_41, %c0_42] : memref<8x1xf32, #tpu.memory_space<vmem>>, vector<8x1xf32>
      %cst_43 = arith.constant 0.333333343 : f32
      %88 = vector.broadcast %cst_43 : f32 to vector<8x1xf32>
      %89 = arith.mulf %87, %88 : vector<8x1xf32>
      %cst_44 = arith.constant 1.000000e+00 : f32
      %90 = vector.broadcast %cst_44 : f32 to vector<8x1xf32>
      %91 = arith.subf %89, %90 : vector<8x1xf32>
      %cst_45 = arith.constant 5.000000e-01 : f32
      %92 = vector.broadcast %cst_45 : f32 to vector<8x1xf32>
      %93 = arith.mulf %92, %86 : vector<8x1xf32>
      %cst_46 = arith.constant 9.99999974E-6 : f32
      %94 = vector.broadcast %cst_46 : f32 to vector<8x1xf32>
      %95 = arith.addf %94, %93 : vector<8x1xf32>
      %cst_47 = arith.constant 5.000000e-01 : f32
      %96 = vector.broadcast %cst_47 : f32 to vector<8x1xf32>
      %97 = arith.mulf %96, %91 : vector<8x1xf32>
      %98 = arith.addf %95, %97 : vector<8x1xf32>
      %99 = arith.divf %83, %98 : vector<8x1xf32>
      %cst_48 = arith.constant 9.99999974E-6 : f32
      %100 = vector.broadcast %cst_48 : f32 to vector<8x1xf32>
      %101 = arith.addf %100, %99 : vector<8x1xf32>
      %102 = math.log %101 : vector<8x1xf32>
      %cst_49 = arith.constant 0.000000e+00 : f32
      %103 = vector.broadcast %cst_49 : f32 to vector<8x1xf32>
      %104 = arith.subf %103, %102 : vector<8x1xf32>
      %c0_50 = arith.constant 0 : index
      %c0_51 = arith.constant 0 : index
      %105 = vector.load %arg6[%c0_50, %c0_51] : memref<8x1xf32, #tpu.memory_space<vmem>>, vector<8x1xf32>
      tpu.vector_store %arg6[%c0_50, %c0_51], %104 {strides = array<i32>} : memref<8x1xf32, #tpu.memory_space<vmem>>, vector<8x1xf32>,
    } else {
    }
    return
  }
  func.func @transform_0(%arg0: i32, %arg1: i32) -> (i32, i32) {
    %c0_i32 = arith.constant 0 : i32
    %c0_i32_0 = arith.constant 0 : i32
    return %arg0, %c0_i32 : i32, i32
  }
  func.func @transform_1(%arg0: i32, %arg1: i32) -> (i32, i32) {
    %c0_i32 = arith.constant 0 : i32
    %c0_i32_0 = arith.constant 0 : i32
    return %c0_i32, %arg1 : i32, i32
  }
  func.func @transform_2(%arg0: i32, %arg1: i32) -> (i32, i32) {
    %c0_i32 = arith.constant 0 : i32
    %c0_i32_0 = arith.constant 0 : i32
    return %arg0, %c0_i32 : i32, i32
  }
  func.func @transform_3(%arg0: i32, %arg1: i32) -> (i32, i32) {
    %c0_i32 = arith.constant 0 : i32
    %c0_i32_0 = arith.constant 0 : i32
    return %c0_i32, %arg1 : i32, i32
  }
  func.func @transform_4(%arg0: i32, %arg1: i32) -> (i32, i32) {
    %c0_i32 = arith.constant 0 : i32
    %c0_i32_0 = arith.constant 0 : i32
    return %arg0, %c0_i32 : i32, i32
  }
}

</mosaic_0001>

<bundles_post_ra>
// kernel: tpu_custom_call.1
= control target key start
LH: loop header
LB: loop body
LE: loop exit
PB: predicated region body
PF: predicated region fallthrough
CT: control target
= control target key end

     0   :  { %v174_v0 = vmov 3   ;;  %v175_v1 = vmov 0   ;;  %v176_v3 = vmov 1   ;;  %v177_v4 = vmov 2   ;;  %s226_s0 = inlined_call_operand.vmem [shape: f32[8,4], index: 0, kind: input, shape index: {}]   ;;  %s227_s2 = inlined_call_operand.vmem [shape: f32[8,1], index: 2, kind: input, shape index: {}]   ;;  %s228_s1 = inlined_call_operand.vmem [shape: f32[4,128], index: 1, kind: input, shape index: {}]   ;;  %s229_s3 = inlined_call_operand.vmem [shape: f32[1,128], index: 3, kind: input, shape index: {}]   ;;  %s230_s4 = inlined_call_operand.vmem [shape: f32[8,1], index: 4, kind: output, shape index: {}]  }
   0x1   :  { %158 = vset.pattern.permute.xlu1 %v174_v0  ;;  %156 = vset.pattern.permute.xlu0 %v175_v1  ;;  %v25_v2 = vld [vmem:[%s226_s0] sm:$0xff]  ;;  %v48_v6 = vlaneseq  ;;  %vm21_vm1 = vcmask 7168   ;;  %v178_v49 = vmov 0.0  }
   0x2   :  { %103 = vperm.xlu1 %158, %v25_v2   ;;  %70 = vperm.xlu0 %156, %v25_v2   ;;  %v27_v5 = vld [vmem:[%s227_s2] sm:$0xff]  ;;  %24 = vst.msk [vmem:[#allocation4] sm:$0xff] %vm21_vm1, %v178_v49  ;;  %22 = vst.msk [vmem:[#allocation2] sm:$0xff] %vm21_vm1, %v178_v49 }
   0x3   :  { %v49_v7 = vshrl.u32 %v48_v6, 7  ;;  %v26_v10 = vld [vmem:[%s228_s1] sm:$0xf]  ;;  %23 = vst.msk [vmem:[#allocation3] sm:$0xff] %vm21_vm1, %v178_v49 }
   0x4   :  { %v147_v33 = vld [vmem:[%s229_s3] ss:$0 sm:$0xff] }
   0x5   :  { %v75_v8 = vsub.s32 0, %v49_v7  ;;  %v108_v9 = vsub.s32 3, %v49_v7  ;;  %v50_v13 = vsub.s32 1, %v49_v7  ;;  %v91_v14 = vsub.s32 2, %v49_v7 }
   0x6   :  { %159 = vset.pattern.permute.xlu1 %v176_v3  ;;  %157 = vset.pattern.permute.xlu0 %v177_v4 }
   0x7   :  { %45 = vperm.xlu1 %159, %v25_v2   ;;  %86 = vperm.xlu0 %157, %v25_v2   ;;  %v76_v11 = vrot.slane %v26_v10, %v75_v8  ;;  %v109_v12 = vrot.slane %v26_v10, %v108_v9  ;;  %v51_v19 = vrot.slane %v26_v10, %v50_v13 }
   0x8   :  { %v92_v20 = vrot.slane %v26_v10, %v91_v14 }
   0x9   :  { %v119_v55 = vld [vmem:[#allocation4] sm:$0xff]  ;;  %v63_v56 = vld [vmem:[#allocation2] sm:$0xff] }
   0xa   :  { %v57_v53 = vld [vmem:[#allocation3] sm:$0xff] }
   0xb   :  { %160 = vset.pattern.permute.xlu1 %v175_v1  ;;  %161 = vset.pattern.permute.xlu0 %v174_v0 }
   0xc   :  { %37 = vperm.xlu1 %160, %v27_v5  }
  0x81   :  { %v71_v15 = vpop.permute.xlu0 %70  ;;  %v104_v16 = vpop.permute.xlu1 %103 }
  0x82   :  { %v77_v17 = vsub.f32 %v71_v15, %v76_v11  ;;  %v110_v18 = vsub.f32 %v104_v16, %v109_v12 }
  0x84   :  { %v78_v21 = vmul.f32 %v77_v17, %v77_v17  ;;  %v111_v22 = vmul.f32 %v110_v18, %v110_v18 }
  0x86   :  { %v79_v23 = vmul.f32 -0.5, %v78_v21  ;;  %v112_v24 = vmul.f32 -0.5, %v111_v22  ;;  %v46_v25 = vpop.permute.xlu1 %45  ;;  %v87_v26 = vpop.permute.xlu0 %86 }
  0x87   :  { %v52_v27 = vsub.f32 %v46_v25, %v51_v19  ;;  %v93_v28 = vsub.f32 %v87_v26, %v92_v20 }
  0x88   :  { %v80_v29 = vmul.f32 1.442695, %v79_v23  ;;  %v113_v30 = vmul.f32 1.442695, %v112_v24 }
  0x89   :  { %v53_v31 = vmul.f32 %v52_v27, %v52_v27  ;;  %v94_v32 = vmul.f32 %v93_v28, %v93_v28 }
  0x8a   :  { %162 = vpow2.f32 %v80_v29 }
  0x8b   :  { %v54_v34 = vmul.f32 -0.5, %v53_v31  ;;  %v95_v35 = vmul.f32 -0.5, %v94_v32  ;;  %v38_v36 = vpop.permute.xlu1 %37  ;;  %164 = vpow2.f32 %v113_v30 }
  0x8c   :  { %v40_v37 = vsub.f32 %v147_v33, %v38_v36 }
  0x8d   :  { %v96_v38 = vmul.f32 1.442695, %v95_v35  ;;  %v55_v39 = vmul.f32 1.442695, %v54_v34 }
  0x8e   :  { %v41_v40 = vand.u32 2147483647, %v40_v37 }
  0x8f   :  { %166 = vpow2.f32 %v96_v38 }
  0x90   :  { %168 = vpow2.f32 %v55_v39  ;;  %vm42_vm0 = vcmp.le.f32.partialorder %v41_v40, 0.5 }
  0x94   :  { %v163_v41 = vpop.eup %162 }
  0x95   :  { %v82_v42 = vsel %vm42_vm0, %v163_v41, 0.0  ;;  %v165_v43 = vpop.eup %164 }
  0x96   :  { %83 = vadd.xlane.f32.xlu0 %v82_v42  ;;  %v115_v44 = vsel %vm42_vm0, %v165_v43, 0.0 }
  0x99   :  { %v167_v45 = vpop.eup %166 }
  0x9a   :  { %116 = vadd.xlane.f32.xlu0 %v115_v44  ;;  %v98_v46 = vsel %vm42_vm0, %v167_v45, 0.0  ;;  %v169_v47 = vpop.eup %168 }
  0x9b   :  { %99 = vadd.xlane.f32.xlu1 %v98_v46  ;;  %v64_v48 = vsel %vm42_vm0, %v169_v47, 0.0 }
  0x9e   :  { %58 = vadd.xlane.f32.xlu0 %v169_v47 }
  0x9f   :  { %65 = vadd.xlane.f32.xlu1 %v64_v48 }
 0x123   :  { %v84_v50 = vpop.xlane.xlu0 %83 }
 0x127   :  { %v117_v51 = vpop.xlane.xlu0 %116 }
 0x128   :  { %v100_v52 = vpop.xlane.xlu1 %99 }
 0x129   :  { %v101_v54 = vadd.f32 %v100_v52, %v84_v50 }
 0x12b   :  { %v59_v57 = vpop.xlane.xlu0 %58  ;;  %v118_v58 = vadd.f32 %v117_v51, %v101_v54 }
 0x12c   :  { %v60_v59 = vadd.f32 %v59_v57, %v57_v53  ;;  %v66_v60 = vpop.xlane.xlu1 %65 }
 0x12d   :  { %v120_v61 = vadd.f32 %v119_v55, %v118_v58  ;;  %v67_v62 = vadd.f32 %v66_v60, %v63_v56 }
 0x12e   :  { %62 = vst.msk [vmem:[#allocation3] sm:$0xff] %vm21_vm1, %v60_v59 }
 0x12f   :  { %121 = vst.msk [vmem:[#allocation4] sm:$0xff] %vm21_vm1, %v120_v61  ;;  %68 = vst.msk [vmem:[#allocation2] sm:$0xff] %vm21_vm1, %v67_v62 }
 0x135   :  { %v127_v63 = vld [vmem:[#allocation3] sm:$0xff] }
 0x136   :  { %v149_v0 = vadd.f32 -1.0, %v127_v63  ;;  %v129_v1 = vld [vmem:[#allocation4] sm:$0xff]  ;;  %v125_v8 = vld [vmem:[#allocation2] sm:$0xff] }
 0x137   :  { %v130_v2 = vmul.f32 0.33333334, %v129_v1  ;;  %v148_v9 = vadd.f32 -1.0, %v125_v8 }
 0x138   :  { %v132_v3 = vmul.f32 0.5, %v149_v0 }
 0x139   :  { %v150_v4 = vadd.f32 -1.0, %v130_v2 }
 0x13a   :  { %v133_v5 = vadd.f32 1e-05, %v132_v3 }
 0x13b   :  { %v134_v6 = vmul.f32 0.5, %v150_v4 }
 0x13d   :  { %v135_v7 = vadd.f32 %v134_v6, %v133_v5 }
 0x13f   :  { %170 = vrcp.f32 %v135_v7 }
 0x149   :  { %v171_v10 = vpop.eup %170 }
 0x14a   :  { %v137_v11 = vmul.f32 %v171_v10, %v148_v9 }
 0x14c   :  { %v138_v12 = vadd.f32 1e-05, %v137_v11 }
 0x14e   :  { %172 = vlog2.f32 %v138_v12 }
 0x158   :  { %v173_v13 = vpop.eup %172 }
 0x159   :  { %v140_v14 = vmul.f32 0.6931472, %v173_v13 }
 0x15b   :  { %v141_v15 = vsub.f32 0.0, %v140_v14 }
 0x15d   :  { %142 = vst.msk [vmem:[%s230_s4] sm:$0xff] %vm21_vm1, %v141_v15 }

</bundles_post_ra>
